<compile_context>
chip_gen: v7x
topology: tpu7x:2x2x1
jax: 0.10.0
libtpu: 0.0.40
codegen_flags: <defaults>
</compile_context>

<pallas_src>
import jax
import jax.numpy as jnp
from jax.experimental import pallas as pl
from jax.experimental.pallas import tpu as pltpu

# ---- config mirroring BaseAttention.__init__ (config.n_embd, config.n_head) ----
N_EMBD = 32
N_HEAD = 4
HEAD_DIM = N_EMBD // N_HEAD
assert N_EMBD % N_HEAD == 0, "Embed size needs to be divisible by the number heads"
ATTN_PDROP = 0.1          # nn.Dropout layers exist in __init__ but are NOT applied
ATTN_VALUES_PDROP = 0.1   # in proj_query_key_value, so they are inert here.

# Tokens folded onto the lane axis: 4 * 32 = 128 lanes (lane-dense on all chips).
# On v6e/v7x FOLD=8 (256-wide) would also fill one native MXU pass.
FOLD = 4
LANE_E = FOLD * N_EMBD    # 128


def _round_up(a, b):
    return -(-a // b) * b


# ----------------------------- Pallas kernel -----------------------------------
def _make_fused_kernel(has_input_mask, has_target_mask):
    """Fused masked projection of values/keys/queries in one grid step.

    Ref order: vx, kx, qx, [in_mask], [tgt_mask], wv, wk, wq, vo, ko, qo.
    Token streams / outputs: (tile_rows, FOLD*E) f32.  Masks: same shape, int8.
    Weights: (FOLD*E, FOLD*E) f32 block-diagonal, resident across the grid.
    """
    def kernel(*refs):
        it = iter(refs)
        vx_ref = next(it); kx_ref = next(it); qx_ref = next(it)
        im_ref = next(it) if has_input_mask else None
        tm_ref = next(it) if has_target_mask else None
        wv_ref = next(it); wk_ref = next(it); wq_ref = next(it)
        vo_ref = next(it); ko_ref = next(it); qo_ref = next(it)

        xv = vx_ref[...]
        xk = kx_ref[...]
        xq = qx_ref[...]
        if has_input_mask:                      # masked_fill(~input_mask, 0.0)
            keep = im_ref[...] != 0
            xv = jnp.where(keep, xv, 0.0)
            xk = jnp.where(keep, xk, 0.0)
        if has_target_mask:                     # masked_fill(~target_mask, 0.0)
            keep_q = tm_ref[...] != 0
            xq = jnp.where(keep_q, xq, 0.0)

        vo_ref[...] = jnp.dot(xv, wv_ref[...],
                              preferred_element_type=jnp.float32).astype(vo_ref.dtype)
        ko_ref[...] = jnp.dot(xk, wk_ref[...],
                              preferred_element_type=jnp.float32).astype(ko_ref.dtype)
        qo_ref[...] = jnp.dot(xq, wq_ref[...],
                              preferred_element_type=jnp.float32).astype(qo_ref.dtype)
    return kernel


# ------------------------------ host-side glue ----------------------------------
def _fold_tokens(x, n_tok_pad):
    """(B, L, E) f32 -> (n_tok_pad/FOLD, FOLD*E) with zero padding."""
    B, L, E = x.shape
    x2 = x.reshape(B * L, E)
    pad = n_tok_pad - B * L
    if pad:
        x2 = jnp.pad(x2, ((0, pad), (0, 0)))
    return x2.reshape(n_tok_pad // FOLD, FOLD * E)


def _fold_mask(mask, n_tok_pad, E):
    """(B, L) bool -> (n_tok_pad/FOLD, FOLD*E) int8 (1 = keep, 0 = zero)."""
    m = mask.reshape(-1).astype(jnp.int8)
    pad = n_tok_pad - m.shape[0]
    if pad:
        m = jnp.pad(m, (0, pad))
    m2 = jnp.broadcast_to(m[:, None], (n_tok_pad, E))
    return m2.reshape(n_tok_pad // FOLD, FOLD * E)


def _unfold(y, B, L, heads, E):
    D = E // heads
    return y.reshape(-1, E)[: B * L].reshape(B, L, heads, D)


def _choose_row_tiling(n_rows, tile_m):
    """Pick (tile_rows, padded_rows).  Rows aligned to 32 (safe for int8 tiles);
    keep >=2 grid steps when there is enough work (v7x megacore sharding)."""
    rows32 = _round_up(max(n_rows, 1), 32)
    tile = min(_round_up(tile_m, 32), rows32)
    rows_p = _round_up(rows32, tile)
    if rows_p // tile < 2 and rows32 >= 64:
        tile = _round_up(rows32 // 2, 32)
        rows_p = _round_up(rows32, tile)
    return tile, rows_p


def fused_masked_projection(values, keys, queries, input_mask, target_mask,
                            wv_fold, wk_fold, wq_fold, heads, *, tile_m=1024):
    """Fused values/keys/queries masked per-head projection.

    values/keys/queries: (B, L, E) f32
    input_mask:  (B, L) bool or None  (applies to values and keys)
    target_mask: (B, L) bool or None  (applies to queries)
    w*_fold:     (FOLD*E, FOLD*E) f32 block-diagonal kron(I, W^T)
    returns three (B, L, heads, E//heads) f32 arrays.
    """
    B, Lv, E = values.shape
    _, Lk, _ = keys.shape
    _, Lq, _ = queries.shape
    Ef = FOLD * E

    n_tok = max(B * Lv, B * Lk, B * Lq)
    n_rows = _round_up(n_tok, FOLD) // FOLD
    tile_rows, rows_p = _choose_row_tiling(n_rows, tile_m)
    n_tok_pad = rows_p * FOLD

    has_im = input_mask is not None
    has_tm = target_mask is not None

    stream_spec = pl.BlockSpec((tile_rows, Ef), lambda i: (i, 0))
    weight_spec = pl.BlockSpec((Ef, Ef), lambda i: (0, 0))     # VMEM-resident

    inputs = [_fold_tokens(values, n_tok_pad),
              _fold_tokens(keys, n_tok_pad),
              _fold_tokens(queries, n_tok_pad)]
    in_specs = [stream_spec, stream_spec, stream_spec]
    if has_im:
        inputs.append(_fold_mask(input_mask, n_tok_pad, E))
        in_specs.append(stream_spec)
    if has_tm:
        inputs.append(_fold_mask(target_mask, n_tok_pad, E))
        in_specs.append(stream_spec)
    inputs += [wv_fold, wk_fold, wq_fold]
    in_specs += [weight_spec, weight_spec, weight_spec]

    out_shape = tuple(jax.ShapeDtypeStruct((rows_p, Ef), values.dtype) for _ in range(3))
    out_specs = [stream_spec, stream_spec, stream_spec]

    vo, ko, qo = pl.pallas_call(
        _make_fused_kernel(has_im, has_tm),
        out_shape=out_shape,
        grid_spec=pltpu.PrefetchScalarGridSpec(
            num_scalar_prefetch=0,
            grid=(rows_p // tile_rows,),
            in_specs=in_specs,
            out_specs=out_specs,
        ),
        compiler_params=pltpu.CompilerParams(
            dimension_semantics=("parallel",)),
    )(*inputs)

    return (_unfold(vo, B, Lv, heads, E),
            _unfold(ko, B, Lk, heads, E),
            _unfold(qo, B, Lq, heads, E))


# ------------------------------ module wrapper ----------------------------------
class BaseAttentionPallas:
    DFLT_MAX_REL_POS = 50

    def __init__(self, key, causal=None, mode=None):
        self.embed_size = N_EMBD
        self.head_dim = HEAD_DIM
        self.heads = N_HEAD
        self.causal = causal
        self.mode = mode
        kv, kk, kq, kf = jax.random.split(key, 4)
        bound = 1.0 / (HEAD_DIM ** 0.5)  # ~nn.Linear default uniform init
        self.w_values = jax.random.uniform(kv, (HEAD_DIM, HEAD_DIM), jnp.float32, -bound, bound)
        self.w_keys = jax.random.uniform(kk, (HEAD_DIM, HEAD_DIM), jnp.float32, -bound, bound)
        self.w_queries = jax.random.uniform(kq, (HEAD_DIM, HEAD_DIM), jnp.float32, -bound, bound)
        bound_fc = 1.0 / (N_EMBD ** 0.5)
        # fc_out is declared in __init__ but only used by subclass forward()s; kept for parity.
        self.w_fc_out = jax.random.uniform(kf, (N_EMBD, N_HEAD * HEAD_DIM), jnp.float32,
                                           -bound_fc, bound_fc)
        # Precompute the folded block-diagonal weights once (128x128, 64 KiB each):
        # kron(I_{FOLD*H}, W^T) == per-head nn.Linear applied to folded token rows.
        eye = jnp.eye(FOLD * self.heads, dtype=jnp.float32)
        self.w_values_fold = jnp.kron(eye, self.w_values.T)
        self.w_keys_fold = jnp.kron(eye, self.w_keys.T)
        self.w_queries_fold = jnp.kron(eye, self.w_queries.T)

    def proj_query_key_value(self, values, keys, queries,
                             input_mask=None, target_mask=None):
        return fused_masked_projection(
            values, keys, queries, input_mask, target_mask,
            self.w_values_fold, self.w_keys_fold, self.w_queries_fold,
            self.heads)

    @staticmethod
    def get_causal_mask(dim_a, dim_b):
        # mask generation, not a compute hot path -> plain JAX
        return jnp.tril(jnp.ones((dim_a, dim_b), jnp.float32)) == 1

    def forward(self, *inputs):
        # TODO(synk): BaseAttention.forward is @abstractmethod (raises NotImplementedError);
        # there is no concrete attention computation in the base class to translate.
        raise NotImplementedError


# ------------------------------ reference + demo --------------------------------
def _ref_proj(x, mask, w, heads):
    if mask is not None:
        x = jnp.where(mask[:, :, None], x, 0.0)
    B, L, E = x.shape
    D = E // heads
    xr = x.reshape(B, L, heads, D)
    return jnp.einsum("blhd,od->blho", xr, w)  # nn.Linear: x @ W^T


if __name__ == "__main__":
    B, L = 2, 8
    key = jax.random.PRNGKey(0)
    kmod, kv, kk, kq = jax.random.split(key, 4)

    attn = BaseAttentionPallas(kmod, causal=True, mode="full")

    values = jax.random.normal(kv, (B, L, N_EMBD), jnp.float32)
    keys_x = jax.random.normal(kk, (B, L, N_EMBD), jnp.float32)
    queries = jax.random.normal(kq, (B, L, N_EMBD), jnp.float32)

    # padding masks: True = real token, False = pad (matches masked_fill(~mask, 0.0))
    tok = jnp.arange(L)
    input_mask = jnp.stack([tok < L, tok < (L - 2)])      # (B, L) bool
    target_mask = jnp.stack([tok < (L - 1), tok < L])     # (B, L) bool

    v, k, q = attn.proj_query_key_value(values, keys_x, queries,
                                        input_mask=input_mask,
                                        target_mask=target_mask)
    jax.block_until_ready((v, k, q))

    # numerical check against pure-JAX reference (masked path)
    v_ref = _ref_proj(values, input_mask, attn.w_values, N_HEAD)
    k_ref = _ref_proj(keys_x, input_mask, attn.w_keys, N_HEAD)
    q_ref = _ref_proj(queries, target_mask, attn.w_queries, N_HEAD)
    assert v.shape == (B, L, N_HEAD, HEAD_DIM)
    assert jnp.max(jnp.abs(v - v_ref)) < 1e-5
    assert jnp.max(jnp.abs(k - k_ref)) < 1e-5
    assert jnp.max(jnp.abs(q - q_ref)) < 1e-5

    # unmasked path (mask branch compiled out entirely)
    v2, k2, q2 = attn.proj_query_key_value(values, keys_x, queries)
    jax.block_until_ready((v2, k2, q2))
    assert jnp.max(jnp.abs(v2 - _ref_proj(values, None, attn.w_values, N_HEAD))) < 1e-5
    assert jnp.max(jnp.abs(q2 - _ref_proj(queries, None, attn.w_queries, N_HEAD))) < 1e-5

    # causal mask helper sanity
    cm = BaseAttentionPallas.get_causal_mask(L, L)
    assert bool(cm[0, 0]) and not bool(cm[0, 1])

    print("KERNEL_OK")
</pallas_src>

<mosaic_0001>
module attributes {stable_mosaic.version = 11 : i64} {
  func.func @kernel(%arg0: i32, %arg1: memref<32x128xf32, #tpu.memory_space<vmem>>, %arg2: memref<32x128xf32, #tpu.memory_space<vmem>>, %arg3: memref<32x128xf32, #tpu.memory_space<vmem>>, %arg4: memref<32x128xi8, #tpu.memory_space<vmem>>, %arg5: memref<32x128xi8, #tpu.memory_space<vmem>>, %arg6: memref<128x128xf32, #tpu.memory_space<vmem>>, %arg7: memref<128x128xf32, #tpu.memory_space<vmem>>, %arg8: memref<128x128xf32, #tpu.memory_space<vmem>>, %arg9: memref<32x128xf32, #tpu.memory_space<vmem>>, %arg10: memref<32x128xf32, #tpu.memory_space<vmem>>, %arg11: memref<32x128xf32, #tpu.memory_space<vmem>>) attributes {dimension_semantics = [#tpu.dimension_semantics<parallel>], iteration_bounds = array<i64: 1>, scalar_prefetch = 0 : i64, scratch_operands = 0 : i64, tpu.core_type = #tpu.core_type<tc>, window_params = [{transform_indices = @transform_0, window_bounds = array<i64: 32, 128>}, {transform_indices = @transform_1, window_bounds = array<i64: 32, 128>}, {transform_indices = @transform_2, window_bounds = array<i64: 32, 128>}, {transform_indices = @transform_3, window_bounds = array<i64: 32, 128>}, {transform_indices = @transform_4, window_bounds = array<i64: 32, 128>}, {pipeline_mode = #tpu.pipeline_mode<synchronous>, transform_indices = @transform_5, window_bounds = array<i64: 128, 128>}, {pipeline_mode = #tpu.pipeline_mode<synchronous>, transform_indices = @transform_6, window_bounds = array<i64: 128, 128>}, {pipeline_mode = #tpu.pipeline_mode<synchronous>, transform_indices = @transform_7, window_bounds = array<i64: 128, 128>}, {transform_indices = @transform_8, window_bounds = array<i64: 32, 128>}, {transform_indices = @transform_9, window_bounds = array<i64: 32, 128>}, {transform_indices = @transform_10, window_bounds = array<i64: 32, 128>}]} {
    %c0 = arith.constant 0 : index
    %c0_0 = arith.constant 0 : index
    %0 = vector.load %arg1[%c0, %c0_0] : memref<32x128xf32, #tpu.memory_space<vmem>>, vector<32x128xf32>
    %c0_1 = arith.constant 0 : index
    %c0_2 = arith.constant 0 : index
    %1 = vector.load %arg2[%c0_1, %c0_2] : memref<32x128xf32, #tpu.memory_space<vmem>>, vector<32x128xf32>
    %c0_3 = arith.constant 0 : index
    %c0_4 = arith.constant 0 : index
    %2 = vector.load %arg3[%c0_3, %c0_4] : memref<32x128xf32, #tpu.memory_space<vmem>>, vector<32x128xf32>
    %c0_5 = arith.constant 0 : index
    %c0_6 = arith.constant 0 : index
    %3 = vector.load %arg4[%c0_5, %c0_6] : memref<32x128xi8, #tpu.memory_space<vmem>>, vector<32x128xi8>
    %c0_i8 = arith.constant 0 : i8
    %4 = vector.broadcast %c0_i8 : i8 to vector<32x128xi8>
    %5 = arith.cmpi ne, %3, %4 : vector<32x128xi8>
    %cst = arith.constant 0.000000e+00 : f32
    %6 = vector.broadcast %cst : f32 to vector<32x128xf32>
    %7 = arith.select %5, %0, %6 : vector<32x128xi1>, vector<32x128xf32>
    %cst_7 = arith.constant 0.000000e+00 : f32
    %8 = vector.broadcast %cst_7 : f32 to vector<32x128xf32>
    %9 = arith.select %5, %1, %8 : vector<32x128xi1>, vector<32x128xf32>
    %c0_8 = arith.constant 0 : index
    %c0_9 = arith.constant 0 : index
    %10 = vector.load %arg5[%c0_8, %c0_9] : memref<32x128xi8, #tpu.memory_space<vmem>>, vector<32x128xi8>
    %c0_i8_10 = arith.constant 0 : i8
    %11 = vector.broadcast %c0_i8_10 : i8 to vector<32x128xi8>
    %12 = arith.cmpi ne, %10, %11 : vector<32x128xi8>
    %cst_11 = arith.constant 0.000000e+00 : f32
    %13 = vector.broadcast %cst_11 : f32 to vector<32x128xf32>
    %14 = arith.select %12, %2, %13 : vector<32x128xi1>, vector<32x128xf32>
    %c0_12 = arith.constant 0 : index
    %c0_13 = arith.constant 0 : index
    %15 = vector.load %arg6[%c0_12, %c0_13] : memref<128x128xf32, #tpu.memory_space<vmem>>, vector<128x128xf32>
    %cst_14 = arith.constant dense<0.000000e+00> : vector<32x128xf32>
    %16 = tpu.matmul %7, %15, %cst_14 {dimension_numbers = #tpu.dot_dimension_numbers<[1], [0], [0], [1], [0, 0, 1, 1], [], []>} : vector<32x128xf32>, vector<128x128xf32>, vector<32x128xf32> -> vector<32x128xf32>
    %c0_15 = arith.constant 0 : index
    %c0_16 = arith.constant 0 : index
    %17 = vector.load %arg9[%c0_15, %c0_16] : memref<32x128xf32, #tpu.memory_space<vmem>>, vector<32x128xf32>
    tpu.vector_store %arg9[%c0_15, %c0_16], %16 {strides = array<i32>} : memref<32x128xf32, #tpu.memory_space<vmem>>, vector<32x128xf32>,
    %c0_17 = arith.constant 0 : index
    %c0_18 = arith.constant 0 : index
    %18 = vector.load %arg7[%c0_17, %c0_18] : memref<128x128xf32, #tpu.memory_space<vmem>>, vector<128x128xf32>
    %cst_19 = arith.constant dense<0.000000e+00> : vector<32x128xf32>
    %19 = tpu.matmul %9, %18, %cst_19 {dimension_numbers = #tpu.dot_dimension_numbers<[1], [0], [0], [1], [0, 0, 1, 1], [], []>} : vector<32x128xf32>, vector<128x128xf32>, vector<32x128xf32> -> vector<32x128xf32>
    %c0_20 = arith.constant 0 : index
    %c0_21 = arith.constant 0 : index
    %20 = vector.load %arg10[%c0_20, %c0_21] : memref<32x128xf32, #tpu.memory_space<vmem>>, vector<32x128xf32>
    tpu.vector_store %arg10[%c0_20, %c0_21], %19 {strides = array<i32>} : memref<32x128xf32, #tpu.memory_space<vmem>>, vector<32x128xf32>,
    %c0_22 = arith.constant 0 : index
    %c0_23 = arith.constant 0 : index
    %21 = vector.load %arg8[%c0_22, %c0_23] : memref<128x128xf32, #tpu.memory_space<vmem>>, vector<128x128xf32>
    %cst_24 = arith.constant dense<0.000000e+00> : vector<32x128xf32>
    %22 = tpu.matmul %14, %21, %cst_24 {dimension_numbers = #tpu.dot_dimension_numbers<[1], [0], [0], [1], [0, 0, 1, 1], [], []>} : vector<32x128xf32>, vector<128x128xf32>, vector<32x128xf32> -> vector<32x128xf32>
    %c0_25 = arith.constant 0 : index
    %c0_26 = arith.constant 0 : index
    %23 = vector.load %arg11[%c0_25, %c0_26] : memref<32x128xf32, #tpu.memory_space<vmem>>, vector<32x128xf32>
    tpu.vector_store %arg11[%c0_25, %c0_26], %22 {strides = array<i32>} : memref<32x128xf32, #tpu.memory_space<vmem>>, vector<32x128xf32>,
    return
  }
  func.func @transform_0(%arg0: i32) -> (i32, i32) {
    %c0_i32 = arith.constant 0 : i32
    %c0_i32_0 = arith.constant 0 : i32
    return %arg0, %c0_i32 : i32, i32
  }
  func.func @transform_1(%arg0: i32) -> (i32, i32) {
    %c0_i32 = arith.constant 0 : i32
    %c0_i32_0 = arith.constant 0 : i32
    return %arg0, %c0_i32 : i32, i32
  }
  func.func @transform_2(%arg0: i32) -> (i32, i32) {
    %c0_i32 = arith.constant 0 : i32
    %c0_i32_0 = arith.constant 0 : i32
    return %arg0, %c0_i32 : i32, i32
  }
  func.func @transform_3(%arg0: i32) -> (i32, i32) {
    %c0_i32 = arith.constant 0 : i32
    %c0_i32_0 = arith.constant 0 : i32
    return %arg0, %c0_i32 : i32, i32
  }
  func.func @transform_4(%arg0: i32) -> (i32, i32) {
    %c0_i32 = arith.constant 0 : i32
    %c0_i32_0 = arith.constant 0 : i32
    return %arg0, %c0_i32 : i32, i32
  }
  func.func @transform_5(%arg0: i32) -> (i32, i32) {
    %c0_i32 = arith.constant 0 : i32
    %c0_i32_0 = arith.constant 0 : i32
    %c0_i32_1 = arith.constant 0 : i32
    return %c0_i32, %c0_i32_0 : i32, i32
  }
  func.func @transform_6(%arg0: i32) -> (i32, i32) {
    %c0_i32 = arith.constant 0 : i32
    %c0_i32_0 = arith.constant 0 : i32
    %c0_i32_1 = arith.constant 0 : i32
    return %c0_i32, %c0_i32_0 : i32, i32
  }
  func.func @transform_7(%arg0: i32) -> (i32, i32) {
    %c0_i32 = arith.constant 0 : i32
    %c0_i32_0 = arith.constant 0 : i32
    %c0_i32_1 = arith.constant 0 : i32
    return %c0_i32, %c0_i32_0 : i32, i32
  }
  func.func @transform_8(%arg0: i32) -> (i32, i32) {
    %c0_i32 = arith.constant 0 : i32
    %c0_i32_0 = arith.constant 0 : i32
    return %arg0, %c0_i32 : i32, i32
  }
  func.func @transform_9(%arg0: i32) -> (i32, i32) {
    %c0_i32 = arith.constant 0 : i32
    %c0_i32_0 = arith.constant 0 : i32
    return %arg0, %c0_i32 : i32, i32
  }
  func.func @transform_10(%arg0: i32) -> (i32, i32) {
    %c0_i32 = arith.constant 0 : i32
    %c0_i32_0 = arith.constant 0 : i32
    return %arg0, %c0_i32 : i32, i32
  }
}

</mosaic_0001>

<bundles_post_ra>
// kernel: tpu_custom_call.1
= control target key start
LH: loop header
LB: loop body
LE: loop exit
PB: predicated region body
PF: predicated region fallthrough
CT: control target
= control target key end

     0   :  { %16 = vsyncpa [#allocation3], 0  ;;  %s1396_s0 = inlined_call_operand.hbm [shape: f32[32,128], index: 0, kind: input, shape index: {}]   ;;  %s1397_s1 = inlined_call_operand.hbm [shape: f32[32,128], index: 1, kind: input, shape index: {}]   ;;  %s1398_s2 = inlined_call_operand.hbm [shape: f32[32,128], index: 2, kind: input, shape index: {}]   ;;  %s1399_s3 = inlined_call_operand.vmem [shape: s8[32,128], index: 3, kind: input, shape index: {}]   ;;  %s1400_s4 = inlined_call_operand.hbm [shape: s8[32,128], index: 4, kind: input, shape index: {}]   ;;  %s1401_s5 = inlined_call_operand.hbm [shape: f32[128,128], index: 5, kind: input, shape index: {}]   ;;  %s1402_s6 = inlined_call_operand.hbm [shape: f32[128,128], index: 6, kind: input, shape index: {}]   ;;  %s1403_s7 = inlined_call_operand.hbm [shape: f32[128,128], index: 7, kind: input, shape index: {}]   ;;  %s1404_s8 = inlined_call_operand.hbm [shape: f32[32,128], index: 8, kind: output, shape index: {0}]   ;;  %s1405_s9 = inlined_call_operand.hbm [shape: f32[32,128], index: 9, kind: output, shape index: {1}]   ;;  %s1406_s10 = inlined_call_operand.hbm [shape: f32[32,128], index: 10, kind: output, shape index: {2}]  }
   0x1   :  { %17 = vsyncpa [#allocation6], 0 }
   0x2   :  { %18 = vsyncpa [#allocation9], 0 }
   0x3   :  { %19 = vsyncpa [#allocation12], 0 }
   0x4   :  { %20 = vsyncpa [#allocation4], 0 }
   0x5   :  { %21 = vsyncpa [#allocation16], 0  ;;  %s1124_s13 = smov [#allocation5]   ;;  %s1125_s15 = smov [#allocation8]  }
   0x6   :  { %s39_s14 = sshll.u32 %s1124_s13, 4  ;;  %s66_s16 = sshll.u32 %s1125_s15, 4  ;;  %s40_s14 = int_to_ptr.vmem [resolvable:$true] %s39_s14  ;;  %s67_s16 = int_to_ptr.vmem [resolvable:$true] %s66_s16 }
   0x7   :  { %s892_s19 = scalar_lea.hbm %s1397_s1, 512 }
   0x8   :  { %p893_p0 = scmp.ne.s32.totalorder %s1397_s1, %s892_s19  ;;  %p896_p1 = scmp.lt.u32.totalorder %s892_s19, %s1397_s1 }
   0xa   :  { %p898_p2 = pnand %p896_p1, %p893_p0 }
   0xc   :  { %901 = shalt.err (!%p898_p2)
}
   0xd   :  { %s902_s24 = scalar_lea.vmem %s40_s14, 512  ;;  %p907_p4 = scmp.lt.s32.totalorder %s40_s14, %s40_s14 }
   0xe   :  { %p903_p3 = scmp.ne.s32.totalorder %s40_s14, %s902_s24  ;;  %p908_p5 = scmp.lt.s32.totalorder %s902_s24, %s902_s24 }
  0x10   :  { %p909_p6 = por %p908_p5, %p907_p4 }
  0x12   :  { %p910_p7 = pnand %p909_p6, %p903_p3 }
  0x14   :  { %913 = shalt.err (!%p910_p7)
}
  0x15   :  { %s1126_s25 = smov 128   ;;  %s1127_s26 = smov 8  }
  0x16   :  { %45 = dma.hbm_to_vmem [thread:$0]  %s1397_s1, 512, %s40_s14, [#allocation6], %s1126_s25, %s1126_s25, %s1127_s26  }
  0x17   :  { %s914_s11 = scalar_lea.hbm %s1400_s4, 128 }
  0x18   :  { %p915_p8 = scmp.ne.s32.totalorder %s1400_s4, %s914_s11  ;;  %p918_p9 = scmp.lt.u32.totalorder %s914_s11, %s1400_s4 }
  0x1a   :  { %p920_p10 = pnand %p918_p9, %p915_p8 }
  0x1c   :  { %923 = shalt.err (!%p920_p10)
}
  0x1d   :  { %s924_s18 = scalar_lea.vmem %s67_s16, 128  ;;  %p929_p12 = scmp.lt.s32.totalorder %s67_s16, %s67_s16 }
  0x1e   :  { %p925_p11 = scmp.ne.s32.totalorder %s67_s16, %s924_s18  ;;  %p930_p13 = scmp.lt.s32.totalorder %s924_s18, %s924_s18 }
  0x20   :  { %p931_p0 = por %p930_p13, %p929_p12 }
  0x22   :  { %p932_p1 = pnand %p931_p0, %p925_p11 }
  0x24   :  { %935 = shalt.err (!%p932_p1)
}
  0x25   :  { %69 = dma.hbm_to_vmem [thread:$0]  %s1400_s4, 128, %s67_s16, [#allocation9]  }
  0x26   :  { %s1128_s19 = smov [#allocation11]   ;;  %s1129_s21 = smov [#allocation2]  }
  0x27   :  { %s87_s20 = sshll.u32 %s1128_s19, 4  ;;  %s27_s22 = sshll.u32 %s1129_s21, 4  ;;  %s88_s20 = int_to_ptr.vmem [resolvable:$true] %s87_s20  ;;  %s1219_s22 = int_to_ptr.vmem [resolvable:$true] %s27_s22 }
  0x28   :  { %s936_s27 = scalar_lea.hbm %s1402_s6, 2048 }
  0x29   :  { %p937_p2 = scmp.ne.s32.totalorder %s1402_s6, %s936_s27  ;;  %p940_p3 = scmp.lt.u32.totalorder %s936_s27, %s1402_s6 }
  0x2b   :  { %p942_p4 = pnand %p940_p3, %p937_p2 }
  0x2d   :  { %945 = shalt.err (!%p942_p4)
}
  0x2e   :  { %s946_s4 = scalar_lea.vmem %s88_s20, 2048  ;;  %p951_p6 = scmp.lt.s32.totalorder %s88_s20, %s88_s20 }
  0x2f   :  { %p947_p5 = scmp.ne.s32.totalorder %s88_s20, %s946_s4  ;;  %p952_p7 = scmp.lt.s32.totalorder %s946_s4, %s946_s4 }
  0x31   :  { %p953_p8 = por %p952_p7, %p951_p6 }
  0x33   :  { %p954_p9 = pnand %p953_p8, %p947_p5 }
  0x35   :  { %957 = shalt.err (!%p954_p9)
}
  0x36   :  { %93 = dma.hbm_to_vmem [thread:$0]  %s1402_s6, 2048, %s88_s20, [#allocation12], %s1126_s25, %s1126_s25, %s1127_s26  }
  0x37   :  { %s958_s17 = scalar_lea.hbm %s1396_s0, 512 }
  0x38   :  { %p959_p10 = scmp.ne.s32.totalorder %s1396_s0, %s958_s17  ;;  %p962_p11 = scmp.lt.u32.totalorder %s958_s17, %s1396_s0 }
  0x3a   :  { %p964_p12 = pnand %p962_p11, %p959_p10 }
  0x3c   :  { %967 = shalt.err (!%p964_p12)
}
  0x3d   :  { %s968_s21 = scalar_lea.vmem %s1219_s22, 512  ;;  %p973_p0 = scmp.lt.s32.totalorder %s1219_s22, %s1219_s22 }
  0x3e   :  { %p969_p13 = scmp.ne.s32.totalorder %s1219_s22, %s968_s21  ;;  %p974_p1 = scmp.lt.s32.totalorder %s968_s21, %s968_s21 }
  0x40   :  { %p975_p2 = por %p974_p1, %p973_p0 }
  0x42   :  { %p976_p3 = pnand %p975_p2, %p969_p13 }
  0x44   :  { %979 = shalt.err (!%p976_p3)
}
  0x45   :  { %33 = dma.hbm_to_vmem [thread:$0]  %s1396_s0, 512, %s1219_s22, [#allocation3], %s1126_s25, %s1126_s25, %s1127_s26  }
  0x46   :  { %s1130_s23 = smov [#allocation7]   ;;  %s1131_s27 = smov [#allocation10]  }
  0x47   :  { %s51_s24 = sshll.u32 %s1130_s23, 4  ;;  %s75_s28 = sshll.u32 %s1131_s27, 4  ;;  %s52_s24 = int_to_ptr.vmem [resolvable:$true] %s51_s24  ;;  %s1256_s28 = int_to_ptr.vmem [resolvable:$true] %s75_s28 }
  0x48   :  { %s980_s11 = scalar_lea.hbm %s1398_s2, 512 }
  0x49   :  { %p981_p4 = scmp.ne.s32.totalorder %s1398_s2, %s980_s11  ;;  %p984_p5 = scmp.lt.u32.totalorder %s980_s11, %s1398_s2 }
  0x4b   :  { %p986_p6 = pnand %p984_p5, %p981_p4 }
  0x4d   :  { %989 = shalt.err (!%p986_p6)
}
  0x4e   :  { %s990_s0 = scalar_lea.vmem %s52_s24, 512  ;;  %p995_p8 = scmp.lt.s32.totalorder %s52_s24, %s52_s24 }
  0x4f   :  { %p991_p7 = scmp.ne.s32.totalorder %s52_s24, %s990_s0  ;;  %p996_p9 = scmp.lt.s32.totalorder %s990_s0, %s990_s0 }
  0x51   :  { %p997_p10 = por %p996_p9, %p995_p8 }
  0x53   :  { %p998_p11 = pnand %p997_p10, %p991_p7 }
  0x55   :  { %1001 = shalt.err (!%p998_p11)
}
  0x56   :  { %57 = dma.hbm_to_vmem [thread:$0]  %s1398_s2, 512, %s52_s24, [#allocation6], %s1126_s25, %s1126_s25, %s1127_s26  }
  0x57   :  { %s1002_s1 = scalar_lea.hbm %s1401_s5, 2048 }
  0x58   :  { %p1003_p12 = scmp.ne.s32.totalorder %s1401_s5, %s1002_s1  ;;  %p1006_p13 = scmp.lt.u32.totalorder %s1002_s1, %s1401_s5 }
  0x5a   :  { %p1008_p0 = pnand %p1006_p13, %p1003_p12 }
  0x5c   :  { %1011 = shalt.err (!%p1008_p0)
}
  0x5d   :  { %s1012_s20 = scalar_lea.vmem %s1256_s28, 2048  ;;  %p1017_p2 = scmp.lt.s32.totalorder %s1256_s28, %s1256_s28 }
  0x5e   :  { %p1013_p1 = scmp.ne.s32.totalorder %s1256_s28, %s1012_s20  ;;  %p1018_p3 = scmp.lt.s32.totalorder %s1012_s20, %s1012_s20 }
  0x60   :  { %p1019_p4 = por %p1018_p3, %p1017_p2 }
  0x62   :  { %p1020_p5 = pnand %p1019_p4, %p1013_p1 }
  0x64   :  { %1023 = shalt.err (!%p1020_p5)
}
  0x65   :  { %81 = dma.hbm_to_vmem [thread:$0]  %s1401_s5, 2048, %s1256_s28, [#allocation9], %s1126_s25, %s1126_s25, %s1127_s26  }
  0x66   :  { %s1132_s24 = smov [#allocation13]   ;;  %s1024_s11 = scalar_lea.hbm %s1403_s7, 2048 }
  0x67   :  { %s99_s27 = sshll.u32 %s1132_s24, 4  ;;  %p1025_p6 = scmp.ne.s32.totalorder %s1403_s7, %s1024_s11  ;;  %s100_s27 = int_to_ptr.vmem [resolvable:$true] %s99_s27 }
  0x68   :  { %p1028_p7 = scmp.lt.u32.totalorder %s1024_s11, %s1403_s7 }
  0x6a   :  { %p1030_p8 = pnand %p1028_p7, %p1025_p6 }
  0x6c   :  { %1033 = shalt.err (!%p1030_p8)
}
  0x6d   :  { %s1034_s0 = scalar_lea.vmem %s100_s27, 2048  ;;  %p1039_p10 = scmp.lt.s32.totalorder %s100_s27, %s100_s27 }
  0x6e   :  { %p1035_p9 = scmp.ne.s32.totalorder %s100_s27, %s1034_s0  ;;  %p1040_p11 = scmp.lt.s32.totalorder %s1034_s0, %s1034_s0 }
  0x70   :  { %p1041_p12 = por %p1040_p11, %p1039_p10 }
  0x72   :  { %p1042_p13 = pnand %p1041_p12, %p1035_p9 }
  0x74   :  { %1045 = shalt.err (!%p1042_p13)
}
  0x75   :  { %105 = dma.hbm_to_vmem [thread:$0]  %s1403_s7, 2048, %s100_s27, [#allocation12], %s1126_s25, %s1126_s25, %s1127_s26  }
  0x76   :  { %1112 = dma.done.wait [#allocation3], 512  }
  0x77   :  { %1113 = vsyncadd [#allocation3], 4294966784 }
  0x78   :  { %1114 = dma.done.wait [#allocation6], 1024  }
  0x79   :  { %1115 = vsyncadd [#allocation6], 4294966272 }
  0x7a   :  { %1116 = dma.done.wait [#allocation9], 2176  }
  0x7b   :  { %1117 = vsyncadd [#allocation9], 4294965120 }
  0x7c   :  { %1118 = dma.done.wait [#allocation12], 4096  }
  0x7d   :  { %1119 = vsyncadd [#allocation12], 4294963200  ;;  %v215_v0 = vld [vmem:[#allocation10] sm:$0xff]  ;;  %v216_v1 = vld [vmem:[#allocation10 + $0x8] sm:$0xff]  ;;  %v1133_v30 = vmov 0   ;;  %s1135_s17 = smov [#allocation15]  }
  0x7e   :  { %v320_v2 = vld [vmem:[#allocation11] sm:$0xff]  ;;  %v767_v3 = vpack.c.bf16 %v216_v1, %v215_v0  ;;  %v321_v4 = vld [vmem:[#allocation11 + $0x8] sm:$0xff]  ;;  %v217_v5 = vld [vmem:[#allocation10 + $0x10] sm:$0xff]  ;;  %s547_s18 = sshll.u32 %s1135_s17, 4  ;;  %s1344_s18 = int_to_ptr.vmem [resolvable:$true] %s547_s18 }
  0x7f   :  { %v218_v6 = vld [vmem:[#allocation10 + $0x18] sm:$0xff]  ;;  %v799_v7 = vpack.c.bf16 %v321_v4, %v320_v2  ;;  %v322_v9 = vld [vmem:[#allocation11 + $0x10] sm:$0xff]  ;;  %v219_v11 = vld [vmem:[#allocation10 + $0x20] sm:$0xff] }
  0x80   :  { %v771_v8 = vpack.c.bf16 %v218_v6, %v217_v5  ;;  %v323_v10 = vld [vmem:[#allocation11 + $0x18] sm:$0xff]  ;;  %768 = vmatprep.subr.bf16.mxu0 %v767_v3  ;;  %v220_v13 = vld [vmem:[#allocation10 + $0x28] sm:$0xff]  ;;  %v324_v14 = vld [vmem:[#allocation11 + $0x20] sm:$0xff] }
  0x81   :  { %v803_v12 = vpack.c.bf16 %v323_v10, %v322_v9  ;;  %v325_v15 = vld [vmem:[#allocation11 + $0x28] sm:$0xff]  ;;  %800 = vmatprep.subr.bf16.mxu1 %v799_v7  ;;  %770 = vmatpush3.bf16.msra.mxu0 %v767_v3  ;;  %v775_v16 = vpack.c.bf16 %v220_v13, %v219_v11  ;;  %v221_v18 = vld [vmem:[#allocation10 + $0x30] sm:$0xff]  ;;  %v222_v19 = vld [vmem:[#allocation10 + $0x38] sm:$0xff] }
  0x82   :  { %802 = vmatpush3.bf16.msra.mxu1 %v799_v7  ;;  %772 = vmatprep.subr.bf16.mxu0 %v771_v8  ;;  %v807_v17 = vpack.c.bf16 %v325_v15, %v324_v14  ;;  %v326_v20 = vld [vmem:[#allocation11 + $0x30] sm:$0xff]  ;;  %v327_v21 = vld [vmem:[#allocation11 + $0x38] sm:$0xff]  ;;  %v779_v22 = vpack.c.bf16 %v222_v19, %v221_v18  ;;  %v223_v24 = vld [vmem:[#allocation10 + $0x40] sm:$0xff] }
  0x83   :  { %804 = vmatprep.subr.bf16.mxu1 %v803_v12  ;;  %v811_v23 = vpack.c.bf16 %v327_v21, %v326_v20  ;;  %v224_v25 = vld [vmem:[#allocation10 + $0x48] sm:$0xff]  ;;  %v328_v26 = vld [vmem:[#allocation11 + $0x40] sm:$0xff]  ;;  %v141_v28 = vld [vmem:[%s1399_s3] sm:$0xff]  ;;  %s1134_s3 = smov [#allocation14]  }
  0x84   :  { %v329_v27 = vld [vmem:[#allocation11 + $0x48] sm:$0xff]  ;;  %vm142_vm0 = vnez %v141_v28  ;;  %v783_v29 = vpack.c.bf16 %v224_v25, %v223_v24  ;;  %v225_v33 = vld [vmem:[#allocation10 + $0x50] sm:$0xff]  ;;  %v226_v34 = vld [vmem:[#allocation10 + $0x58] sm:$0xff]  ;;  %s535_s15 = sshll.u32 %s1134_s3, 4  ;;  %s536_s15 = int_to_ptr.vmem [resolvable:$true] %s535_s15 }
  0x85   :  { %774 = vmatpush3.bf16.msra.mxu0 %v771_v8  ;;  %v143_v31 = vsel %vm142_vm0, 16843009, %v1133_v30  ;;  %v815_v32 = vpack.c.bf16 %v329_v27, %v328_v26  ;;  %v330_v38 = vld [vmem:[#allocation11 + $0x50] sm:$0xff]  ;;  %v331_v39 = vld [vmem:[#allocation11 + $0x58] sm:$0xff]  ;;  %v787_v43 = vpack.c.bf16 %v226_v34, %v225_v33  ;;  %v227_v46 = vld [vmem:[#allocation10 + $0x60] sm:$0xff]  ;;  %s1046_s1 = scalar_lea.vmem %s536_s15, 512  ;;  %p1051_p1 = scmp.lt.s32.totalorder %s536_s15, %s536_s15 }
  0x86   :  { %806 = vmatpush3.bf16.msra.mxu1 %v803_v12  ;;  %776 = vmatprep.subr.bf16.mxu0 %v775_v16  ;;  %v144_v35 = vunpack.c.0.s8 %v143_v31  ;;  %v145_v36 = vunpack.c.1.s8 %v143_v31  ;;  %v146_v37 = vunpack.c.2.s8 %v143_v31  ;;  %v147_v40 = vunpack.c.3.s8 %v143_v31  ;;  %v228_v47 = vld [vmem:[#allocation10 + $0x68] sm:$0xff]  ;;  %v332_v51 = vld [vmem:[#allocation11 + $0x60] sm:$0xff]  ;;  %v180_v53 = vld [vmem:[#allocation8] sm:$0xff]  ;;  %p1047_p0 = scmp.ne.s32.totalorder %s536_s15, %s1046_s1  ;;  %p1052_p2 = scmp.lt.s32.totalorder %s1046_s1, %s1046_s1 }
  0x87   :  { %808 = vmatprep.subr.bf16.mxu1 %v807_v17  ;;  %v819_v45 = vpack.c.bf16 %v331_v39, %v330_v38  ;;  %v333_v52 = vld [vmem:[#allocation11 + $0x68] sm:$0xff]  ;;  %vm181_vm2 = vnez %v180_v53  ;;  %v791_v54 = vpack.c.bf16 %v228_v47, %v227_v46  ;;  %v229_v58 = vld [vmem:[#allocation10 + $0x70] sm:$0xff]  ;;  %v230_v59 = vld [vmem:[#allocation10 + $0x78] sm:$0xff] }
  0x88   :  { %v148_v41 = vpack.c.b16 %v144_v35, %v144_v35  ;;  %v150_v42 = vpack.c.b16 %v145_v36, %v145_v36  ;;  %v152_v44 = vpack.c.b16 %v146_v37, %v146_v37  ;;  %v154_v50 = vpack.c.b16 %v147_v40, %v147_v40  ;;  %v334_v62 = vld [vmem:[#allocation11 + $0x70] sm:$0xff]  ;;  %v335_v63 = vld [vmem:[#allocation11 + $0x78] sm:$0xff]  ;;  %v425_v9 = vld [vmem:[#allocation13] sm:$0xff]  ;;  %p1053_p3 = por %p1052_p2, %p1051_p1 }
  0x89   :  { %778 = vmatpush3.bf16.msra.mxu0 %v775_v16  ;;  %v823_v57 = vpack.c.bf16 %v333_v52, %v332_v51  ;;  %v129_v0 = vld [vmem:[#allocation2] sm:$0xff]  ;;  %v1315_v1 = vsel %vm181_vm2, 16843009, %v1133_v30  ;;  %v795_v5 = vpack.c.bf16 %v230_v59, %v229_v58  ;;  %v827_v8 = vpack.c.bf16 %v335_v63, %v334_v62  ;;  %v426_v10 = vld [vmem:[#allocation13 + $0x8] sm:$0xff]  ;;  %v427_v19 = vld [vmem:[#allocation13 + $0x10] sm:$0xff] }
  0x8a   :  { %810 = vmatpush3.bf16.msra.mxu1 %v807_v17  ;;  %780 = vmatprep.subr.bf16.mxu0 %v779_v22  ;;  %v149_v48 = vpack.c.b8 %v148_v41, %v148_v41  ;;  %v151_v49 = vpack.c.b8 %v150_v42, %v150_v42  ;;  %v153_v56 = vpack.c.b8 %v152_v44, %v152_v44  ;;  %v133_v3 = vld [vmem:[#allocation5] sm:$0xff]  ;;  %v183_v4 = vunpack.c.0.s8 %v1315_v1  ;;  %v134_v25 = vld [vmem:[#allocation5 + $0x8] sm:$0xff]  ;;  %v131_v31 = vld [vmem:[#allocation2 + $0x10] sm:$0xff]  ;;  %p1054_p4 = pnand %p1053_p3, %p1047_p0 }
  0x8b   :  { %812 = vmatprep.subr.bf16.mxu1 %v811_v23  ;;  %v155_v61 = vpack.c.b8 %v154_v50, %v154_v50  ;;  %v185_v7 = vunpack.c.2.s8 %v1315_v1  ;;  %v831_v16 = vpack.c.bf16 %v426_v10, %v425_v9  ;;  %v428_v20 = vld [vmem:[#allocation13 + $0x18] sm:$0xff]  ;;  %v429_v28 = vld [vmem:[#allocation13 + $0x20] sm:$0xff]  ;;  %v135_v34 = vld [vmem:[#allocation5 + $0x10] sm:$0xff]  ;;  %v184_v46 = vunpack.c.1.s8 %v1315_v1 }
  0x8c   :  { %vm156_vm1 = vnez %v149_v48  ;;  %vm157_vm3 = vnez %v151_v49  ;;  %vm158_vm5 = vnez %v153_v56  ;;  %v187_v11 = vpack.c.b16 %v183_v4, %v183_v4  ;;  %v132_v35 = vld [vmem:[#allocation2 + $0x18] sm:$0xff]  ;;  %v432_v40 = vld [vmem:[#allocation13 + $0x38] sm:$0xff]  ;;  %v139_v42 = vld [vmem:[#allocation7 + $0x10] sm:$0xff] }
  0x8d   :  { %782 = vmatpush3.bf16.msra.mxu0 %v779_v22  ;;  %v160_v55 = vsel %vm156_vm1, 16843009, %v1133_v30  ;;  %v161_v6 = vsel %vm157_vm3, 16843009, %v1133_v30  ;;  %vm159_vm6 = vnez %v155_v61  ;;  %v191_v12 = vpack.c.b16 %v185_v7, %v185_v7  ;;  %v130_v22 = vld [vmem:[#allocation2 + $0x8] sm:$0xff]  ;;  %v136_v38 = vld [vmem:[#allocation5 + $0x18] sm:$0xff] }
  0x8e   :  { %814 = vmatpush3.bf16.msra.mxu1 %v811_v23  ;;  %784 = vmatprep.subr.bf16.mxu0 %v783_v29  ;;  %v164_v60 = vunpack.c.0.s8 %v160_v55  ;;  %v165_v13 = vunpack.c.0.s8 %v161_v6  ;;  %v162_v14 = vsel %vm158_vm5, 16843009, %v1133_v30  ;;  %v188_v15 = vpack.c.b8 %v187_v11, %v187_v11  ;;  %v431_v39 = vld [vmem:[#allocation13 + $0x30] sm:$0xff]  ;;  %v137_v41 = vld [vmem:[#allocation7] sm:$0xff]  ;;  %v433_v44 = vld [vmem:[#allocation13 + $0x40] sm:$0xff] }
  0x8f   :  { %816 = vmatprep.subr.bf16.mxu1 %v815_v32  ;;  %v163_v17 = vsel %vm159_vm6, 16843009, %v1133_v30  ;;  %v192_v18 = vpack.c.b8 %v191_v12, %v191_v12  ;;  %v166_v21 = vunpack.c.0.s8 %v162_v14  ;;  %v835_v26 = vpack.c.bf16 %v428_v20, %v427_v19  ;;  %v435_v49 = vld [vmem:[#allocation13 + $0x50] sm:$0xff]  ;;  %v436_v50 = vld [vmem:[#allocation13 + $0x58] sm:$0xff]  ;;  %v438_v55 = vld [vmem:[#allocation13 + $0x68] sm:$0xff] }
  0x90   :  { %vm1317_vm4 = vcmp.ne.s32.totalorder %v164_v60, 0  ;;  %vm195_vm7 = vnez %v188_v15  ;;  %vm169_vm9 = vcmp.ne.s32.totalorder %v165_v13, 0  ;;  %v167_v23 = vunpack.c.0.s8 %v163_v17  ;;  %v439_v59 = vld [vmem:[#allocation13 + $0x70] sm:$0xff]  ;;  %v440_v60 = vld [vmem:[#allocation13 + $0x78] sm:$0xff]  ;;  %v138_v2 = vld [vmem:[#allocation7 + $0x8] sm:$0xff] }
  0x91   :  { %786 = vmatpush3.bf16.msra.mxu0 %v783_v29  ;;  %685 = vmatprep.mubr.msk.f32.mxu0 %vm1317_vm4, %v129_v0  ;;  %vm197_vm8 = vnez %v192_v18  ;;  %v199_v24 = vsel %vm195_vm7, 16843009, %v1133_v30  ;;  %v430_v29 = vld [vmem:[#allocation13 + $0x28] sm:$0xff]  ;;  %vm1332_vm10 = vcmp.ne.s32.totalorder %v166_v21, 0  ;;  %v186_v47 = vunpack.c.3.s8 %v1315_v1 }
  0x92   :  { %818 = vmatpush3.bf16.msra.mxu1 %v815_v32  ;;  %788 = vmatprep.subr.bf16.mxu0 %v787_v43  ;;  %v201_v27 = vsel %vm197_vm8, 16843009, %v1133_v30  ;;  %v203_v33 = vunpack.c.0.s8 %v199_v24  ;;  %vm171_vm11 = vcmp.ne.s32.totalorder %v167_v23, 0  ;;  %v839_v37 = vpack.c.bf16 %v430_v29, %v429_v28 }
  0x93   :  { %820 = vmatprep.subr.bf16.mxu1 %v819_v45  ;;  %723 = vmatprep.mubr.msk.f32.mxu1 %vm1317_vm4, %v133_v3  ;;  %v205_v36 = vunpack.c.0.s8 %v201_v27  ;;  %v189_v51 = vpack.c.b16 %v184_v46, %v184_v46  ;;  %v193_v52 = vpack.c.b16 %v186_v47, %v186_v47  ;;  %v851_v53 = vpack.c.bf16 %v436_v50, %v435_v49  ;;  %v140_v3 = vld [vmem:[#allocation7 + $0x18] sm:$0xff] }
  0x94   :  { %vm207_vm12 = vcmp.ne.s32.totalorder %v203_v33, 0  ;;  %v859_v61 = vpack.c.bf16 %v440_v60, %v439_v59 }
  0x95   :  { %790 = vmatpush3.bf16.msra.mxu0 %v787_v43  ;;  %vm209_vm13 = vcmp.ne.s32.totalorder %v205_v36, 0  ;;  %v843_v43 = vpack.c.bf16 %v432_v40, %v431_v39  ;;  %v190_v56 = vpack.c.b8 %v189_v51, %v189_v51 }
  0x96   :  { %822 = vmatpush3.bf16.msra.mxu1 %v819_v45  ;;  %792 = vmatprep.subr.bf16.mxu0 %v791_v54  ;;  %v434_v45 = vld [vmem:[#allocation13 + $0x48] sm:$0xff] }
  0x97   :  { %824 = vmatprep.subr.bf16.mxu1 %v823_v57  ;;  %v847_v48 = vpack.c.bf16 %v434_v45, %v433_v44  ;;  %vm196_vm14 = vnez %v190_v56 }
  0x98   :  { %v200_v62 = vsel %vm196_vm14, 16843009, %v1133_v30 }
  0x99   :  { %794 = vmatpush3.bf16.msra.mxu0 %v791_v54  ;;  %v437_v54 = vld [vmem:[#allocation13 + $0x60] sm:$0xff]  ;;  %v204_v0 = vunpack.c.0.s8 %v200_v62 }
  0x9a   :  { %826 = vmatpush3.bf16.msra.mxu1 %v823_v57  ;;  %796 = vmatprep.subr.bf16.mxu0 %v795_v5  ;;  %v194_v57 = vpack.c.b8 %v193_v52, %v193_v52  ;;  %v855_v58 = vpack.c.bf16 %v438_v55, %v437_v54 }
  0x9b   :  { %828 = vmatprep.subr.bf16.mxu1 %v827_v8  ;;  %vm208_vm0 = vcmp.ne.s32.totalorder %v204_v0, 0 }
  0x9c   :  { %vm198_vm15 = vnez %v194_v57 }
  0x9d   :  { %798 = vmatpush3.bf16.msra.mxu0 %v795_v5  ;;  %v202_v63 = vsel %vm198_vm15, 16843009, %v1133_v30 }
  0x9e   :  { %830 = vmatpush3.bf16.msra.mxu1 %v827_v8  ;;  %832 = vmatprep.subr.bf16.mxu0 %v831_v16  ;;  %v206_v1 = vunpack.c.0.s8 %v202_v63 }
  0x9f   :  { %863 = vmatprep.subr.bf16.mxu1 %v831_v16 }
  0xa0   :  { %686 = vmatmul.mubr.msk.f32.vlgmr.msra.gmra.mrb[0].mxu0 %vm169_vm9, %v130_v22  ;;  %vm210_vm1 = vcmp.ne.s32.totalorder %v206_v1, 0 }
  0xa1   :  { %724 = vmatmul.mubr.msk.f32.vlgmr.msra.gmra.mrb[0].mxu1 %vm169_vm9, %v134_v25  ;;  %834 = vmatpush3.bf16.msra.mxu0 %v831_v16 }
  0xa2   :  { %871 = vmatpush3.bf16.msra.mxu1 %v831_v16  ;;  %836 = vmatprep.subr.bf16.mxu0 %v835_v26 }
  0xa3   :  { %864 = vmatprep.subr.bf16.mxu1 %v835_v26  ;;  %688 = vmatprep.mubr.msk.f32.mxu0 %vm1332_vm10, %v131_v31 }
  0xa4   :  { %726 = vmatprep.mubr.msk.f32.mxu1 %vm1332_vm10, %v135_v34  ;;  %689 = vmatmul.mubr.msk.f32.gmra.mrb[2].mxu0 %vm171_vm11, %v132_v35 }
  0xa5   :  { %838 = vmatpush3.bf16.msra.mxu0 %v835_v26  ;;  %727 = vmatmul.mubr.msk.f32.gmra.mrb[2].mxu1 %vm171_vm11, %v136_v38 }
  0xa6   :  { %872 = vmatpush3.bf16.msra.mxu1 %v835_v26  ;;  %840 = vmatprep.subr.bf16.mxu0 %v839_v37 }
  0xa7   :  { %865 = vmatprep.subr.bf16.mxu1 %v839_v37  ;;  %761 = vmatprep.mubr.msk.f32.mxu0 %vm207_vm12, %v137_v41 }
  0xa8   :  { %764 = vmatprep.mubr.msk.f32.mxu1 %vm209_vm13, %v139_v42 }
  0xa9   :  { %842 = vmatpush3.bf16.msra.mxu0 %v839_v37 }
  0xaa   :  { %873 = vmatpush3.bf16.msra.mxu1 %v839_v37  ;;  %844 = vmatprep.subr.bf16.mxu0 %v843_v43 }
  0xab   :  { %866 = vmatprep.subr.bf16.mxu1 %v843_v43 }
  0xad   :  { %846 = vmatpush3.bf16.msra.mxu0 %v843_v43 }
  0xae   :  { %874 = vmatpush3.bf16.msra.mxu1 %v843_v43  ;;  %848 = vmatprep.subr.bf16.mxu0 %v847_v48 }
  0xaf   :  { %867 = vmatprep.subr.bf16.mxu1 %v847_v48 }
  0xb1   :  { %850 = vmatpush3.bf16.msra.mxu0 %v847_v48 }
  0xb2   :  { %875 = vmatpush3.bf16.msra.mxu1 %v847_v48  ;;  %852 = vmatprep.subr.bf16.mxu0 %v851_v53 }
  0xb3   :  { %868 = vmatprep.subr.bf16.mxu1 %v851_v53 }
  0xb5   :  { %854 = vmatpush3.bf16.msra.mxu0 %v851_v53 }
  0xb6   :  { %876 = vmatpush3.bf16.msra.mxu1 %v851_v53  ;;  %856 = vmatprep.subr.bf16.mxu0 %v855_v58 }
  0xb7   :  { %869 = vmatprep.subr.bf16.mxu1 %v855_v58 }
  0xb9   :  { %858 = vmatpush3.bf16.msra.mxu0 %v855_v58 }
  0xba   :  { %877 = vmatpush3.bf16.msra.mxu1 %v855_v58  ;;  %860 = vmatprep.subr.bf16.mxu0 %v859_v61 }
  0xbb   :  { %870 = vmatprep.subr.bf16.mxu1 %v859_v61 }
  0xbd   :  { %862 = vmatpush3.bf16.msra.mxu0 %v859_v61 }
  0xbe   :  { %878 = vmatpush3.bf16.msra.mxu1 %v859_v61 }
  0xc0   :  { %762 = vmatmul.mubr.msk.f32.vlgmr.msra.gmra.mrb[4].mxu0 %vm208_vm0, %v138_v2 }
  0xc1   :  { %765 = vmatmul.mubr.msk.f32.vlgmr.msra.gmra.mrb[4].mxu1 %vm210_vm1, %v140_v3 }
 0x173   :  { %v687_v4 = vpop.f32.mrb[0].mxu0 }
 0x174   :  { %317 = vst [vmem:[#allocation14 + $0x8] sm:$0xff] %v687_v4  ;;  %v725_v5 = vpop.f32.mrb[0].mxu1  ;;  %v297_v6 = vpop.f32.mrb[1].mxu0 }
 0x175   :  { %422 = vst [vmem:[#allocation15 + $0x8] sm:$0xff] %v725_v5  ;;  %316 = vst [vmem:[#allocation14] sm:$0xff] %v297_v6  ;;  %v402_v30 = vpop.f32.mrb[1].mxu1 }
 0x176   :  { %421 = vst [vmem:[#allocation15] sm:$0xff] %v402_v30 }
 0x177   :  { %v690_v7 = vpop.f32.mrb[2].mxu0 }
 0x178   :  { %319 = vst [vmem:[#allocation14 + $0x18] sm:$0xff] %v690_v7  ;;  %v728_v8 = vpop.f32.mrb[2].mxu1  ;;  %v307_v9 = vpop.f32.mrb[3].mxu0 }
 0x179   :  { %424 = vst [vmem:[#allocation15 + $0x18] sm:$0xff] %v728_v8  ;;  %318 = vst [vmem:[#allocation14 + $0x10] sm:$0xff] %v307_v9  ;;  %v412_v10 = vpop.f32.mrb[3].mxu1 }
 0x17a   :  { %423 = vst [vmem:[#allocation15 + $0x10] sm:$0xff] %v412_v10 }
 0x17b   :  { %1057 = shalt.err (!%p1054_p4)
}
 0x17c   :  { %s1058_s21 = scalar_lea.hbm %s1404_s8, 512 }
 0x17d   :  { %p1059_p5 = scmp.ne.s32.totalorder %s1404_s8, %s1058_s21  ;;  %p1062_p6 = scmp.lt.u32.totalorder %s1058_s21, %s1404_s8 }
 0x17f   :  { %p1064_p7 = pnand %p1062_p6, %p1059_p5 }
 0x181   :  { %1067 = shalt.err (!%p1064_p7)
}
 0x182   :  { %541 = dma.vmem_to_hbm [thread:$0]  %s536_s15, 512, %s1404_s8, [#allocation4], %s1126_s25, %s1126_s25, %s1127_s26  }
 0x183   :  { %s1068_s29 = scalar_lea.vmem %s1344_s18, 512  ;;  %p1073_p9 = scmp.lt.s32.totalorder %s1344_s18, %s1344_s18 }
 0x184   :  { %p1069_p8 = scmp.ne.s32.totalorder %s1344_s18, %s1068_s29  ;;  %p1074_p10 = scmp.lt.s32.totalorder %s1068_s29, %s1068_s29 }
 0x186   :  { %p1075_p11 = por %p1074_p10, %p1073_p9 }
 0x188   :  { %p1076_p12 = pnand %p1075_p11, %p1069_p8 }
 0x18a   :  { %1079 = shalt.err (!%p1076_p12)
}
 0x18b   :  { %s1080_s4 = scalar_lea.hbm %s1405_s9, 512 }
 0x18c   :  { %p1081_p13 = scmp.ne.s32.totalorder %s1405_s9, %s1080_s4  ;;  %p1084_p0 = scmp.lt.u32.totalorder %s1080_s4, %s1405_s9 }
 0x18e   :  { %p1086_p1 = pnand %p1084_p0, %p1081_p13 }
 0x190   :  { %1089 = shalt.err (!%p1086_p1)
}
 0x191   :  { %553 = dma.vmem_to_hbm [thread:$0]  %s1344_s18, 512, %s1405_s9, [#allocation16], %s1126_s25, %s1126_s25, %s1127_s26  }
 0x192   :  { %s1136_s28 = smov [#allocation17]  }
 0x193   :  { %s559_s7 = sshll.u32 %s1136_s28, 4  ;;  %v763_v11 = vpop.f32.mrb[4].mxu0  ;;  %s560_s7 = int_to_ptr.vmem [resolvable:$true] %s559_s7 }
 0x194   :  { %527 = vst [vmem:[#allocation17 + $0x8] sm:$0xff] %v763_v11  ;;  %v766_v12 = vpop.f32.mrb[4].mxu1  ;;  %v507_v13 = vpop.f32.mrb[5].mxu0  ;;  %s1090_s22 = scalar_lea.vmem %s560_s7, 512  ;;  %p1095_p3 = scmp.lt.s32.totalorder %s560_s7, %s560_s7 }
 0x195   :  { %529 = vst [vmem:[#allocation17 + $0x18] sm:$0xff] %v766_v12  ;;  %526 = vst [vmem:[#allocation17] sm:$0xff] %v507_v13  ;;  %v517_v14 = vpop.f32.mrb[5].mxu1  ;;  %p1091_p2 = scmp.ne.s32.totalorder %s560_s7, %s1090_s22  ;;  %p1096_p4 = scmp.lt.s32.totalorder %s1090_s22, %s1090_s22 }
 0x196   :  { %528 = vst [vmem:[#allocation17 + $0x10] sm:$0xff] %v517_v14 }
 0x197   :  { %p1097_p5 = por %p1096_p4, %p1095_p3 }
 0x199   :  { %p1098_p6 = pnand %p1097_p5, %p1091_p2 }
 0x19b   :  { %1101 = shalt.err (!%p1098_p6)
}
 0x19c   :  { %s1102_s15 = scalar_lea.hbm %s1406_s10, 512 }
 0x19d   :  { %p1103_p7 = scmp.ne.s32.totalorder %s1406_s10, %s1102_s15  ;;  %p1106_p8 = scmp.lt.u32.totalorder %s1102_s15, %s1406_s10 }
 0x19f   :  { %p1108_p9 = pnand %p1106_p8, %p1103_p7 }
 0x1a1   :  { %1111 = shalt.err (!%p1108_p9)
}
 0x1a2   :  { %565 = dma.vmem_to_hbm [thread:$0]  %s560_s7, 512, %s1406_s10, [#allocation16], %s1126_s25, %s1126_s25, %s1127_s26  }
 0x1a3   :  { %1120 = dma.done.wait [#allocation4], 512  }
 0x1a4   :  { %1121 = vsyncadd [#allocation4], 4294966784 }
 0x1a5   :  { %1122 = dma.done.wait [#allocation16], 1024  }
 0x1a6   :  { %1123 = vsyncadd [#allocation16], 4294966272 }
 0x1a7   :  { %575 = vsyncpa [#allocation3], 1 }
 0x1a8   :  { %576 = vsyncpa [#allocation6], 1 }
 0x1a9   :  { %577 = vsyncpa [#allocation9], 1 }
 0x1aa   :  { %578 = vsyncpa [#allocation12], 1 }
 0x1ab   :  { %579 = vsyncpa [#allocation4], 1 }
 0x1ac   :  { %580 = vsyncpa [#allocation16], 1 }

</bundles_post_ra>
